<compile_context>
chip_gen: v7x
topology: tpu7x:2x2x1
jax: 0.10.0
libtpu: 0.0.40
codegen_flags: <defaults>
</compile_context>

<pallas_src>
import jax
import jax.numpy as jnp
from jax.experimental import pallas as pl
from jax.experimental.pallas import tpu as pltpu

INPUT_SIZE = 8      # abalone.data.features has 8 numeric columns
HIDDEN_SIZE = 40
OUT_SIZE = 4
DROPOUT_RATE = 0.2  # unused at inference (eval-mode identity)

TILE_B = 16384      # rows per grid step (multiple of 128); ~1.5 MiB in flight


def simple_nn_kernel(xT_ref, w1_ref, b1_ref, w2_ref, b2_ref, oT_ref):
    # xT_ref: [IN, TILE_B]   (batch on lanes)
    # w1_ref: [HID, IN]      b1_ref: [HID, 1]
    # w2_ref: [OUT, HID]     b2_ref: [OUT, 1]
    # oT_ref: [OUT, TILE_B]  (lane-dense output slab)
    h = jnp.dot(w1_ref[...], xT_ref[...],
                preferred_element_type=jnp.float32) + b1_ref[...]
    h = jnp.maximum(h, 0.0)
    # Dropout: eval-mode identity (PyTorch nn.Dropout does nothing in eval()).
    out = jnp.dot(w2_ref[...], h,
                  preferred_element_type=jnp.float32) + b2_ref[...]
    oT_ref[...] = out.astype(oT_ref.dtype)


def simple_nn_forward(x, w1, b1, w2, b2, tile_b=TILE_B):
    """x: [B, INPUT_SIZE] f32 -> [B, OUT_SIZE] f32.

    Weights are in PyTorch layout: w1 [HID, IN], b1 [HID, 1], w2 [OUT, HID],
    b2 [OUT, 1].
    """
    batch = x.shape[0]

    # Batch becomes the lane axis -> align/pad to a multiple of 128 and of the
    # tile so the last grid step never reads OOB.
    b_aligned = pl.cdiv(batch, 128) * 128
    tile = min(tile_b, b_aligned)
    b_pad = pl.cdiv(batch, tile) * tile
    n_tiles = b_pad // tile

    # Wrapper-side layout plumbing: put batch on the last (lane) axis.
    xT = x.T                                       # [IN, B]
    if b_pad != batch:
        xT = jnp.pad(xT, ((0, 0), (0, b_pad - batch)))

    flops = 2 * b_pad * (INPUT_SIZE * HIDDEN_SIZE + HIDDEN_SIZE * OUT_SIZE)
    bytes_accessed = 4 * (
        b_pad * (INPUT_SIZE + OUT_SIZE)
        + HIDDEN_SIZE * INPUT_SIZE + HIDDEN_SIZE
        + OUT_SIZE * HIDDEN_SIZE + OUT_SIZE
    )

    outT = pl.pallas_call(
        simple_nn_kernel,
        out_shape=jax.ShapeDtypeStruct((OUT_SIZE, b_pad), jnp.float32),
        grid=(n_tiles,),
        in_specs=[
            pl.BlockSpec((INPUT_SIZE, tile), lambda i: (0, i)),
            pl.BlockSpec((HIDDEN_SIZE, INPUT_SIZE), lambda i: (0, 0)),
            pl.BlockSpec((HIDDEN_SIZE, 1), lambda i: (0, 0)),
            pl.BlockSpec((OUT_SIZE, HIDDEN_SIZE), lambda i: (0, 0)),
            pl.BlockSpec((OUT_SIZE, 1), lambda i: (0, 0)),
        ],
        out_specs=pl.BlockSpec((OUT_SIZE, tile), lambda i: (0, i)),
        compiler_params=pltpu.CompilerParams(
            dimension_semantics=("parallel",)),
        cost_estimate=pl.CostEstimate(
            flops=flops, transcendentals=0, bytes_accessed=bytes_accessed),
    )(xT, w1, b1, w2, b2)

    # Strip batch padding and return to the [B, OUT] layout callers expect.
    return outT[:, :batch].T


def init_params(key):
    """Deterministic PyTorch-style uniform(-1/sqrt(fan_in), 1/sqrt(fan_in)) init.

    Weights kept in PyTorch-native [out_features, in_features] layout; biases
    stored as column vectors [out_features, 1] for the transposed kernel.
    """
    k1, k2, k3, k4 = jax.random.split(key, 4)
    bound1 = 1.0 / jnp.sqrt(jnp.float32(INPUT_SIZE))
    bound2 = 1.0 / jnp.sqrt(jnp.float32(HIDDEN_SIZE))
    w1 = jax.random.uniform(k1, (HIDDEN_SIZE, INPUT_SIZE), jnp.float32, -bound1, bound1)
    b1 = jax.random.uniform(k2, (HIDDEN_SIZE, 1), jnp.float32, -bound1, bound1)
    w2 = jax.random.uniform(k3, (OUT_SIZE, HIDDEN_SIZE), jnp.float32, -bound2, bound2)
    b2 = jax.random.uniform(k4, (OUT_SIZE, 1), jnp.float32, -bound2, bound2)
    return w1, b1, w2, b2


if __name__ == "__main__":
    key = jax.random.PRNGKey(0)
    k_params, k_x = jax.random.split(key)

    w1, b1, w2, b2 = init_params(k_params)
    batch = 8
    x = jax.random.normal(k_x, (batch, INPUT_SIZE), dtype=jnp.float32)

    out = simple_nn_forward(x, w1, b1, w2, b2)
    out = jax.block_until_ready(out)

    # Reference check in plain JAX (same math, PyTorch-layout weights).
    ref = jnp.maximum(x @ w1.T + b1.reshape(1, -1), 0.0) @ w2.T + b2.reshape(1, -1)
    assert out.shape == (batch, OUT_SIZE)
    assert jnp.allclose(out, ref, atol=1e-4, rtol=1e-4)

    print("KERNEL_OK")
</pallas_src>

<mosaic_0001>
module attributes {stable_mosaic.version = 11 : i64} {
  func.func @simple_nn_kernel(%arg0: i32, %arg1: memref<8x128xf32, #tpu.memory_space<vmem>>, %arg2: memref<40x8xf32, #tpu.memory_space<vmem>>, %arg3: memref<40x1xf32, #tpu.memory_space<vmem>>, %arg4: memref<4x40xf32, #tpu.memory_space<vmem>>, %arg5: memref<4x1xf32, #tpu.memory_space<vmem>>, %arg6: memref<4x128xf32, #tpu.memory_space<vmem>>) attributes {dimension_semantics = [#tpu.dimension_semantics<parallel>], iteration_bounds = array<i64: 1>, scalar_prefetch = 0 : i64, scratch_operands = 0 : i64, tpu.core_type = #tpu.core_type<tc>, window_params = [{transform_indices = @transform_0, window_bounds = array<i64: 8, 128>}, {pipeline_mode = #tpu.pipeline_mode<synchronous>, transform_indices = @transform_1, window_bounds = array<i64: 40, 8>}, {pipeline_mode = #tpu.pipeline_mode<synchronous>, transform_indices = @transform_2, window_bounds = array<i64: 40, 1>}, {pipeline_mode = #tpu.pipeline_mode<synchronous>, transform_indices = @transform_3, window_bounds = array<i64: 4, 40>}, {pipeline_mode = #tpu.pipeline_mode<synchronous>, transform_indices = @transform_4, window_bounds = array<i64: 4, 1>}, {transform_indices = @transform_5, window_bounds = array<i64: 4, 128>}]} {
    %c0 = arith.constant 0 : index
    %c0_0 = arith.constant 0 : index
    %0 = vector.load %arg2[%c0, %c0_0] : memref<40x8xf32, #tpu.memory_space<vmem>>, vector<40x8xf32>
    %c0_1 = arith.constant 0 : index
    %c0_2 = arith.constant 0 : index
    %1 = vector.load %arg1[%c0_1, %c0_2] : memref<8x128xf32, #tpu.memory_space<vmem>>, vector<8x128xf32>
    %cst = arith.constant dense<0.000000e+00> : vector<40x128xf32>
    %2 = tpu.matmul %0, %1, %cst {dimension_numbers = #tpu.dot_dimension_numbers<[1], [0], [0], [1], [0, 0, 1, 1], [], []>} : vector<40x8xf32>, vector<8x128xf32>, vector<40x128xf32> -> vector<40x128xf32>
    %c0_3 = arith.constant 0 : index
    %c0_4 = arith.constant 0 : index
    %3 = vector.load %arg3[%c0_3, %c0_4] : memref<40x1xf32, #tpu.memory_space<vmem>>, vector<40x1xf32>
    %4 = vector.broadcast %3 : vector<40x1xf32> to vector<40x128xf32>
    %5 = arith.addf %2, %4 : vector<40x128xf32>
    %cst_5 = arith.constant 0.000000e+00 : f32
    %6 = vector.broadcast %cst_5 : f32 to vector<40x128xf32>
    %7 = arith.maximumf %5, %6 : vector<40x128xf32>
    %c0_6 = arith.constant 0 : index
    %c0_7 = arith.constant 0 : index
    %8 = vector.load %arg4[%c0_6, %c0_7] : memref<4x40xf32, #tpu.memory_space<vmem>>, vector<4x40xf32>
    %cst_8 = arith.constant dense<0.000000e+00> : vector<4x128xf32>
    %9 = tpu.matmul %8, %7, %cst_8 {dimension_numbers = #tpu.dot_dimension_numbers<[1], [0], [0], [1], [0, 0, 1, 1], [], []>} : vector<4x40xf32>, vector<40x128xf32>, vector<4x128xf32> -> vector<4x128xf32>
    %c0_9 = arith.constant 0 : index
    %c0_10 = arith.constant 0 : index
    %10 = vector.load %arg5[%c0_9, %c0_10] : memref<4x1xf32, #tpu.memory_space<vmem>>, vector<4x1xf32>
    %11 = vector.broadcast %10 : vector<4x1xf32> to vector<4x128xf32>
    %12 = arith.addf %9, %11 : vector<4x128xf32>
    %c0_11 = arith.constant 0 : index
    %c0_12 = arith.constant 0 : index
    %13 = vector.load %arg6[%c0_11, %c0_12] : memref<4x128xf32, #tpu.memory_space<vmem>>, vector<4x128xf32>
    tpu.vector_store %arg6[%c0_11, %c0_12], %12 {strides = array<i32>} : memref<4x128xf32, #tpu.memory_space<vmem>>, vector<4x128xf32>,
    return
  }
  func.func @transform_0(%arg0: i32) -> (i32, i32) {
    %c0_i32 = arith.constant 0 : i32
    %c0_i32_0 = arith.constant 0 : i32
    return %c0_i32, %arg0 : i32, i32
  }
  func.func @transform_1(%arg0: i32) -> (i32, i32) {
    %c0_i32 = arith.constant 0 : i32
    %c0_i32_0 = arith.constant 0 : i32
    %c0_i32_1 = arith.constant 0 : i32
    return %c0_i32, %c0_i32_0 : i32, i32
  }
  func.func @transform_2(%arg0: i32) -> (i32, i32) {
    %c0_i32 = arith.constant 0 : i32
    %c0_i32_0 = arith.constant 0 : i32
    %c0_i32_1 = arith.constant 0 : i32
    return %c0_i32, %c0_i32_0 : i32, i32
  }
  func.func @transform_3(%arg0: i32) -> (i32, i32) {
    %c0_i32 = arith.constant 0 : i32
    %c0_i32_0 = arith.constant 0 : i32
    %c0_i32_1 = arith.constant 0 : i32
    return %c0_i32, %c0_i32_0 : i32, i32
  }
  func.func @transform_4(%arg0: i32) -> (i32, i32) {
    %c0_i32 = arith.constant 0 : i32
    %c0_i32_0 = arith.constant 0 : i32
    %c0_i32_1 = arith.constant 0 : i32
    return %c0_i32, %c0_i32_0 : i32, i32
  }
  func.func @transform_5(%arg0: i32) -> (i32, i32) {
    %c0_i32 = arith.constant 0 : i32
    %c0_i32_0 = arith.constant 0 : i32
    return %c0_i32, %arg0 : i32, i32
  }
}

</mosaic_0001>

<bundles_post_ra>
// kernel: tpu_custom_call.1
= control target key start
LH: loop header
LB: loop body
LE: loop exit
PB: predicated region body
PF: predicated region fallthrough
CT: control target
= control target key end

     0   :  { %vm57_vm0 = vcmask 64512   ;;  %v349_v2 = vmov 0.0   ;;  %vm350_vm1 = vmmov 0   ;;  %v351_v3 = vmov 0   ;;  %s454_s0 = inlined_call_operand.vmem [shape: f32[8,128], index: 0, kind: input, shape index: {}]   ;;  %s455_s1 = inlined_call_operand.vmem [shape: f32[40,8], index: 1, kind: input, shape index: {}]   ;;  %s456_s2 = inlined_call_operand.vmem [shape: f32[40,1], index: 2, kind: input, shape index: {}]   ;;  %s457_s3 = inlined_call_operand.vmem [shape: f32[4,40], index: 3, kind: input, shape index: {}]   ;;  %s458_s4 = inlined_call_operand.vmem [shape: f32[4,1], index: 4, kind: input, shape index: {}]   ;;  %s459_s5 = inlined_call_operand.hbm [shape: f32[4,128], index: 5, kind: output, shape index: {}]  }
   0x1   :  { %v26_v0 = vld [vmem:[%s454_s0] sm:$0xff]  ;;  %282 = vmatprep.subr.mxu0 %v349_v2  ;;  %284 = vmatprep.mubr.msk.f32.mxu0 %vm350_vm1, %v349_v2  ;;  %v29_v5 = vld [vmem:[%s456_s2 + $0x10] sm:$0xff]  ;;  %v22_v6 = vld [vmem:[%s455_s1 + $0x8] sm:$0xff] }
   0x2   :  { %v21_v1 = vld [vmem:[%s455_s1] sm:$0xff]  ;;  %283 = vmatpush3.msra.mxu0 %v26_v0  ;;  %323 = vset.pattern.permute.xlu0 %v351_v3  ;;  %v28_v7 = vld [vmem:[%s456_s2 + $0x8] sm:$0xff] }
   0x3   :  { %v27_v4 = vld [vmem:[%s456_s2] sm:$0xff]  ;;  %285 = vmatmul.mubr.msk.f32.vlgmr.msra.gmra.mrb[0].mxu0 %vm57_vm0, %v21_v1  ;;  %324 = vset.pattern.permute.xlu1 %v351_v3 }
   0x4   :  { %34 = vperm.xlu0 %323, %v27_v4   ;;  %287 = vmatprep.mubr.msk.f32.mxu0 %vm350_vm1, %v349_v2 }
   0x5   :  { %10 = vsyncpa [#allocation3], 0  ;;  %44 = vperm.xlu1 %324, %v29_v5   ;;  %309 = vmatprep.mubr.msk.f32.mxu1 %vm350_vm1, %v349_v2  ;;  %v30_v8 = vld [vmem:[%s456_s2 + $0x18] sm:$0xff]  ;;  %v23_v9 = vld [vmem:[%s455_s1 + $0x10] sm:$0xff]  ;;  %v352_v14 = vmov 0.0|0.0   ;;  %vm175_vm2 = vcmask 326656  }
   0x6   :  { %v31_v10 = vld [vmem:[%s456_s2 + $0x20] sm:$0xff]  ;;  %v24_v12 = vld [vmem:[%s455_s1 + $0x18] sm:$0xff]  ;;  %312 = vmatprep.subr.bf16.mxu1 %v352_v14  ;;  %s353_s15 = smov [#allocation2]  }
   0x7   :  { %288 = vmatmul.mubr.msk.f32.gmra.mrb[2].mxu0 %vm57_vm0, %v22_v6  ;;  %v169_v11 = vld [vmem:[%s458_s4] sm:$0xf]  ;;  %s256_s16 = sshll.u32 %s353_s15, 4  ;;  %s257_s16 = int_to_ptr.vmem [resolvable:$true] %s256_s16 }
   0x8   :  { %39 = vperm.xlu0 %323, %v28_v7   ;;  %290 = vmatprep.mubr.msk.f32.mxu0 %vm350_vm1, %v349_v2  ;;  %v25_v13 = vld [vmem:[%s455_s1 + $0x20] sm:$0xff]  ;;  %s325_s17 = scalar_lea.vmem %s257_s16, 64  ;;  %p330_p1 = scmp.lt.s32.totalorder %s257_s16, %s257_s16 }
   0x9   :  { %49 = vperm.xlu1 %324, %v30_v8   ;;  %v168_v42 = vld [vmem:[%s457_s3] sm:$0xf]  ;;  %p326_p0 = scmp.ne.s32.totalorder %s257_s16, %s325_s17  ;;  %p331_p2 = scmp.lt.s32.totalorder %s325_s17, %s325_s17 }
   0xb   :  { %291 = vmatmul.mubr.msk.f32.gmra.mrb[4].mxu0 %vm57_vm0, %v23_v9  ;;  %p332_p3 = por %p331_p2, %p330_p1 }
   0xc   :  { %54 = vperm.xlu0 %323, %v31_v10   ;;  %293 = vmatprep.mubr.msk.f32.mxu0 %vm350_vm1, %v349_v2 }
   0xd   :  { %172 = vperm.xlu1 %324, %v169_v11   ;;  %p333_p4 = pnand %p332_p3, %p326_p0 }
   0xf   :  { %294 = vmatmul.mubr.msk.f32.gmra.mrb[6].mxu0 %vm57_vm0, %v24_v12 }
  0x10   :  { %296 = vmatprep.mubr.msk.f32.mxu0 %vm350_vm1, %v349_v2 }
  0x13   :  { %297 = vmatmul.mubr.msk.f32.gmra.mrb[8].mxu0 %vm57_vm0, %v25_v13 }
  0x83   :  { %v35_v15 = vpop.permute.xlu0 %34 }
  0x84   :  { %v45_v23 = vpop.permute.xlu1 %44 }
  0x87   :  { %v40_v19 = vpop.permute.xlu0 %39 }
  0x88   :  { %v50_v30 = vpop.permute.xlu1 %49 }
  0x8b   :  { %v55_v36 = vpop.permute.xlu0 %54 }
  0x8c   :  { %v173_v43 = vpop.permute.xlu1 %172 }
  0xd6   :  { %v139_v16 = vpop.f32.mrb[0].mxu0 }
  0xd7   :  { %v286_v17 = vpop.f32.mrb[1].mxu0  ;;  %v140_v18 = vadd.f32 %v139_v16, %v35_v15 }
  0xd9   :  { %v163_v24 = vmax.f32 %v140_v18, 0.0 }
  0xda   :  { %v144_v20 = vpop.f32.mrb[2].mxu0 }
  0xdb   :  { %v145_v21 = vadd.f32 %v144_v20, %v40_v19  ;;  %v289_v22 = vpop.f32.mrb[3].mxu0 }
  0xdd   :  { %v164_v25 = vmax.f32 %v145_v21, 0.0 }
  0xde   :  { %v149_v26 = vpop.f32.mrb[4].mxu0 }
  0xdf   :  { %v292_v27 = vpop.f32.mrb[5].mxu0  ;;  %v313_v28 = vpack.c.bf16 %v164_v25, %v163_v24  ;;  %v150_v29 = vadd.f32 %v149_v26, %v45_v23 }
  0xe1   :  { %314 = vmatpush3.bf16.msra.mxu1 %v313_v28  ;;  %v165_v34 = vmax.f32 %v150_v29, 0.0 }
  0xe2   :  { %v154_v31 = vpop.f32.mrb[6].mxu0  ;;  %315 = vmatprep.subr.bf16.mxu1 %v352_v14 }
  0xe3   :  { %v155_v32 = vadd.f32 %v154_v31, %v50_v30  ;;  %v295_v33 = vpop.f32.mrb[7].mxu0 }
  0xe5   :  { %v166_v35 = vmax.f32 %v155_v32, 0.0 }
  0xe6   :  { %v159_v37 = vpop.f32.mrb[8].mxu0 }
  0xe7   :  { %v316_v38 = vpack.c.bf16 %v166_v35, %v165_v34  ;;  %v160_v39 = vadd.f32 %v159_v37, %v55_v36  ;;  %v298_v40 = vpop.f32.mrb[9].mxu0 }
  0xe9   :  { %317 = vmatpush3.bf16.msra.mxu1 %v316_v38  ;;  %v167_v41 = vmax.f32 %v160_v39, 0.0 }
  0xea   :  { %307 = vmatprep.subr.mxu1 %v349_v2 }
  0xed   :  { %308 = vmatpush3.msra.mxu1 %v167_v41 }
  0xee   :  { %310 = vmatmul.mubr.msk.f32.vlgmr.msra.gmra.mrb[0].mxu1 %vm175_vm2, %v168_v42 }
 0x1c1   :  { %v245_v44 = vpop.f32.mrb[0].mxu1 }
 0x1c2   :  { %v246_v45 = vadd.f32 %v245_v44, %v173_v43  ;;  %v311_v46 = vpop.f32.mrb[1].mxu1 }
 0x1c4   :  { %249 = vst [vmem:[#allocation2] sm:$0xf] %v246_v45 }
 0x1c5   :  { %336 = shalt.err (!%p333_p4)
}
 0x1c6   :  { %s337_s19 = scalar_lea.hbm %s459_s5, 64 }
 0x1c7   :  { %p338_p5 = scmp.ne.s32.totalorder %s459_s5, %s337_s19  ;;  %p341_p6 = scmp.lt.u32.totalorder %s337_s19, %s459_s5 }
 0x1c9   :  { %p343_p7 = pnand %p341_p6, %p338_p5 }
 0x1cb   :  { %346 = shalt.err (!%p343_p7)
}
 0x1cc   :  { %259 = dma.vmem_to_hbm [thread:$0]  %s257_s16, 64, %s459_s5, [#allocation3]  }
 0x1cd   :  { %347 = dma.done.wait [#allocation3], 64  }
 0x1ce   :  { %348 = vsyncadd [#allocation3], 4294967232 }
 0x1cf   :  { %263 = vsyncpa [#allocation3], 1 }

</bundles_post_ra>
